<compile_context>
chip_gen: v6e
topology: v6e:2x2x1
jax: 0.10.0
libtpu: 0.0.40
codegen_flags: <defaults>
</compile_context>

<pallas_src>
import functools

import jax
import jax.numpy as jnp
from jax.experimental import pallas as pl
from jax.experimental.pallas import tpu as pltpu


_NEG_BIG = -1.0e30                      # softmax mask sentinel (avoid inf arithmetic)
_SLAB = 64                              # 64 batch rows / slab row -> 64*14 = 896 = 7*128
_VMEM_LIMIT_BYTES = 32 * 1024 * 1024    # >= scoped defaults on v5e/v6e/v7x
_VMEM_BLOCK_BUDGET = 18 * 1024 * 1024   # lane-padded pipeline-buffer budget per step
_FUSED_MAX_ROWS = 4096                  # single-kernel fast-path threshold


def _round_up(x, m):
    return (x + m - 1) // m * m


def _padded_bytes(rows, cols, itemsize=4):
    """VMEM footprint of a (rows, cols) f32 block after (8, 128) tile padding."""
    return _round_up(max(rows, 1), 8) * _round_up(max(cols, 1), 128) * itemsize


# ---------------------------------------------------------------------------
# Fused single-kernel path (whole batch resident in VMEM).
# ---------------------------------------------------------------------------
def _fused_kernel(x1_ref, x2_ref, w1a_ref, w1b_ref, b1_ref, w2_ref, out_ref, *,
                  valid_rows):
    x1 = x1_ref[...].astype(jnp.bfloat16)
    x2 = x2_ref[...].astype(jnp.bfloat16)
    h = jnp.dot(x1, w1a_ref[...], preferred_element_type=jnp.float32)
    h += jnp.dot(x2, w1b_ref[...], preferred_element_type=jnp.float32)
    h += b1_ref[...]                                        # (1, 10) f32 broadcast
    h = jnp.where(h > 0, h, 0.01 * h)                       # LeakyReLU(0.01)
    logits = jnp.dot(h.astype(jnp.bfloat16), w2_ref[...],
                     preferred_element_type=jnp.float32)    # (Bp, 3); b2 cancels
    # Mask block-padding rows (block is rounded up to a multiple of 16 rows).
    row = jax.lax.broadcasted_iota(jnp.int32, logits.shape, 0)
    logits = jnp.where(row < valid_rows, logits, _NEG_BIG)
    m = jnp.max(logits, axis=0, keepdims=True)              # (1, 3)
    p = jnp.exp(logits - m)                                  # masked rows -> 0
    s = jnp.sum(p, axis=0, keepdims=True)
    out_ref[...] = p * (1.0 / s)


def _fused_forward(x1, x2, w1, b1, w2):
    B = x1.shape[0]
    Bp = _round_up(B, 16)   # block padding only (no data copy); extra rows masked
    w1a = w1[:14].astype(jnp.bfloat16)
    w1b = w1[14:].astype(jnp.bfloat16)
    w2b = w2.astype(jnp.bfloat16)
    b1f = b1.reshape(1, 10).astype(jnp.float32)

    const = lambda i: (0, 0)
    kernel = functools.partial(_fused_kernel, valid_rows=B)
    return pl.pallas_call(
        kernel,
        grid=(1,),
        in_specs=[
            pl.BlockSpec((Bp, 14), const),
            pl.BlockSpec((Bp, 14), const),
            pl.BlockSpec((14, 10), const),
            pl.BlockSpec((14, 10), const),
            pl.BlockSpec((1, 10), const),
            pl.BlockSpec((10, 3), const),
        ],
        out_specs=pl.BlockSpec((Bp, 3), const),
        out_shape=jax.ShapeDtypeStruct((B, 3), jnp.float32),
        compiler_params=pltpu.CompilerParams(
            dimension_semantics=("arbitrary",),
            vmem_limit_bytes=_VMEM_LIMIT_BYTES),
    )(x1, x2, w1a, w1b, b1f, w2b)


# ---------------------------------------------------------------------------
# Tiled path, pass 1: logits (to HBM) + per-tile partial softmax stats.
# Kernel operates on "slab" layout: G batch rows packed per slab row, so the
# feature axis is 14*G wide (lane-dense when G=64) and weights are block-diag.
# ---------------------------------------------------------------------------
def _logits_stats_kernel(x1_ref, x2_ref, w1a_ref, w1b_ref, b1_ref, w2_ref,
                         logits_ref, m_ref, s_ref, *, valid_rows, tile_rows):
    i = pl.program_id(0)
    x1 = x1_ref[...].astype(jnp.bfloat16)
    x2 = x2_ref[...].astype(jnp.bfloat16)
    h = jnp.dot(x1, w1a_ref[...], preferred_element_type=jnp.float32)
    h += jnp.dot(x2, w1b_ref[...], preferred_element_type=jnp.float32)
    h += b1_ref[...]
    h = jnp.where(h > 0, h, 0.01 * h)                       # LeakyReLU(0.01)
    logits = jnp.dot(h.astype(jnp.bfloat16), w2_ref[...],
                     preferred_element_type=jnp.float32)    # (tile_rows, 3*G)
    logits_ref[...] = logits            # ragged-tile OOB rows are dropped on write

    # Mask slab rows past the end of the batch (only the last tile is ragged).
    row = i * tile_rows + jax.lax.broadcasted_iota(jnp.int32, logits.shape, 0)
    masked = jnp.where(row < valid_rows, logits, _NEG_BIG)
    m = jnp.max(masked, axis=0, keepdims=True)                   # (1, 3*G)
    s = jnp.sum(jnp.exp(masked - m), axis=0, keepdims=True)      # (1, 3*G)
    m_ref[...] = m[None]
    s_ref[...] = s[None]


# ---------------------------------------------------------------------------
# Tiled path, pass 2: out = exp(logits - c), c = global max + log(sum-exp).
# ---------------------------------------------------------------------------
def _normalize_kernel(logits_ref, c_ref, out_ref):
    out_ref[...] = jnp.exp(logits_ref[...] - c_ref[...])


def _tiled_forward(x1, x2, w1, b1, w2, *, tile_batch):
    B = x1.shape[0]
    # Lane-dense slab view when possible: (B, 14) -> (B/64, 896) is a free
    # row-major metadata reshape; fall back to G=1 (plain layout) otherwise.
    G = _SLAB if B % _SLAB == 0 else 1
    Bs = B // G
    in_w, hid_w, out_w = 14 * G, 10 * G, 3 * G

    x1s = x1.reshape(Bs, in_w)
    x2s = x2.reshape(Bs, in_w)

    eye = jnp.eye(G, dtype=jnp.float32)
    w1a = jnp.kron(eye, w1[:14]).astype(jnp.bfloat16)       # (14G, 10G) block-diag
    w1b = jnp.kron(eye, w1[14:]).astype(jnp.bfloat16)
    w2b = jnp.kron(eye, w2).astype(jnp.bfloat16)            # (10G, 3G)
    b1s = jnp.tile(b1.reshape(1, 10), (1, G)).astype(jnp.float32)   # (1, 10G)

    # Tile size in slab rows: as large as the lane-padded VMEM budget allows.
    tbs = min(Bs, max(16, (tile_batch // G) // 16 * 16))

    def footprint(t):
        return (4 * _padded_bytes(t, in_w)          # 2 inputs, double-buffered
                + 2 * _padded_bytes(t, out_w)       # logits block, double-buffered
                + 3 * _padded_bytes(t, in_w))       # in-kernel temporaries (rough)

    while tbs > 16 and footprint(tbs) > _VMEM_BLOCK_BUDGET:
        tbs = max(16, (tbs // 2) // 16 * 16)
    if tbs >= Bs:
        tbs = Bs
    n_tiles = pl.cdiv(Bs, tbs)

    row = lambda i: (i, 0)
    const = lambda i: (0, 0)
    stat = lambda i: (i, 0, 0)
    cparams = pltpu.CompilerParams(
        dimension_semantics=("parallel",),       # keep both passes parallel (v7x: 2 TCs)
        vmem_limit_bytes=_VMEM_LIMIT_BYTES)

    # Pass 1: logits + per-tile partial stats.
    p1 = functools.partial(_logits_stats_kernel, valid_rows=Bs, tile_rows=tbs)
    logits, m_part, s_part = pl.pallas_call(
        p1,
        grid=(n_tiles,),
        in_specs=[
            pl.BlockSpec((tbs, in_w), row),
            pl.BlockSpec((tbs, in_w), row),
            pl.BlockSpec((in_w, hid_w), const),
            pl.BlockSpec((in_w, hid_w), const),
            pl.BlockSpec((1, hid_w), const),
            pl.BlockSpec((hid_w, out_w), const),
        ],
        out_specs=(
            pl.BlockSpec((tbs, out_w), row),
            pl.BlockSpec((1, 1, out_w), stat),
            pl.BlockSpec((1, 1, out_w), stat),
        ),
        out_shape=(
            jax.ShapeDtypeStruct((Bs, out_w), jnp.float32),
            jax.ShapeDtypeStruct((n_tiles, 1, out_w), jnp.float32),
            jax.ShapeDtypeStruct((n_tiles, 1, out_w), jnp.float32),
        ),
        compiler_params=cparams,
    )(x1s, x2s, w1a, w1b, b1s, w2b)

    # Merge the per-tile partials in plain XLA (tiny: n_tiles*G rows of 3).
    m_p = m_part.reshape(n_tiles * G, 3)
    s_p = s_part.reshape(n_tiles * G, 3)
    m = jnp.max(m_p, axis=0)                                     # (3,)
    s = jnp.sum(s_p * jnp.exp(m_p - m), axis=0)                  # (3,)
    c = (m + jnp.log(s)).reshape(1, 3)                           # fold max + log(sum)
    c_slab = jnp.tile(c, (1, G))                                 # (1, 3G)

    # Pass 2: normalize.
    out = pl.pallas_call(
        _normalize_kernel,
        grid=(n_tiles,),
        in_specs=[pl.BlockSpec((tbs, out_w), row),
                  pl.BlockSpec((1, out_w), const)],
        out_specs=pl.BlockSpec((tbs, out_w), row),
        out_shape=jax.ShapeDtypeStruct((Bs, out_w), jnp.float32),
        compiler_params=cparams,
    )(logits, c_slab)

    return out.reshape(B, 3)


# ---------------------------------------------------------------------------
# Public forward.
# ---------------------------------------------------------------------------
@functools.partial(jax.jit, static_argnames=("tile_batch", "force_tiled"))
def inverse_model_forward(state_features, next_state_features, params, *,
                          tile_batch=32768, force_tiled=False):
    """InverseModelLSTM.forward.  Inputs are (B, 14) each; returns (B, 3) f32."""
    w1, b1, w2, b2 = params
    del b2   # per-output-column constant: cancels exactly under softmax over dim=0

    B, F = state_features.shape
    assert F == 14 and next_state_features.shape == (B, 14)

    if B <= _FUSED_MAX_ROWS and not force_tiled:
        return _fused_forward(state_features, next_state_features, w1, b1, w2)
    return _tiled_forward(state_features, next_state_features, w1, b1, w2,
                          tile_batch=tile_batch)


# ---------------------------------------------------------------------------
# Parameter init matching the PyTorch module (weights stored as (in, out)).
# Linear weights: xavier_uniform; biases: U(-1/sqrt(fan_in), 1/sqrt(fan_in)).
# ---------------------------------------------------------------------------
def init_params(key):
    k1, k2, k3, k4 = jax.random.split(key, 4)

    def xavier_uniform(k, fan_in, fan_out):
        limit = jnp.sqrt(6.0 / (fan_in + fan_out))
        return jax.random.uniform(k, (fan_in, fan_out), jnp.float32, -limit, limit)

    def bias_init(k, fan_in, fan_out):
        bound = 1.0 / jnp.sqrt(fan_in)
        return jax.random.uniform(k, (fan_out,), jnp.float32, -bound, bound)

    w1 = xavier_uniform(k1, 28, 10)
    b1 = bias_init(k2, 28, 10)
    w2 = xavier_uniform(k3, 10, 3)
    b2 = bias_init(k4, 10, 3)   # kept for module fidelity; no-op under dim-0 softmax
    return (w1, b1, w2, b2)


# ---------------------------------------------------------------------------
# Pure-JAX references.
# ---------------------------------------------------------------------------
def _reference(state, next_state, params, *, match_kernel_precision):
    w1, b1, w2, b2 = params
    b1 = b1.reshape(1, 10)
    b2 = b2.reshape(1, 3)
    if match_kernel_precision:
        # Mirror the kernels' in-kernel bf16 casts (tight check).
        x1 = state.astype(jnp.bfloat16)
        x2 = next_state.astype(jnp.bfloat16)
        h = (jnp.dot(x1, w1[:14].astype(jnp.bfloat16),
                     preferred_element_type=jnp.float32)
             + jnp.dot(x2, w1[14:].astype(jnp.bfloat16),
                       preferred_element_type=jnp.float32)
             + b1)
        h = jnp.where(h > 0, h, 0.01 * h)
        logits = jnp.dot(h.astype(jnp.bfloat16), w2.astype(jnp.bfloat16),
                         preferred_element_type=jnp.float32)
        return jax.nn.softmax(logits, axis=0)   # b2 cancels under dim-0 softmax
    feats = jnp.concatenate([state, next_state], axis=1)
    h = feats @ w1 + b1
    h = jnp.where(h > 0, h, 0.01 * h)
    return jax.nn.softmax(h @ w2 + b2, axis=0)


if __name__ == "__main__":
    key = jax.random.PRNGKey(0)
    kp, kd = jax.random.split(key)
    params = init_params(kp)

    def run_case(B, **kw):
        k1, k2 = jax.random.split(jax.random.fold_in(kd, B))
        s = jax.random.normal(k1, (B, 14), jnp.float32)
        ns = jax.random.normal(k2, (B, 14), jnp.float32)
        out = jax.block_until_ready(inverse_model_forward(s, ns, params, **kw))
        assert out.shape == (B, 3)
        assert bool(jnp.all(jnp.isfinite(out)))
        # Softmax over dim=0 => every output column sums to 1 across the batch.
        assert jnp.allclose(out.sum(axis=0), jnp.ones((3,)), atol=1e-4)
        return s, ns, out

    # 1) Small batch -> fused single-kernel path (the module's natural shape).
    s, ns, out = run_case(2)
    ref_tight = _reference(s, ns, params, match_kernel_precision=True)
    assert jnp.allclose(out, ref_tight, rtol=1e-3, atol=1e-3), "fused vs tight ref"
    ref_f32 = _reference(s, ns, params, match_kernel_precision=False)
    assert jnp.allclose(out, ref_f32, atol=5e-2), "fused vs f32 module ref"

    # 2) Tiled slab path (B % 64 == 0): lane-dense blocks, ragged last tile.
    s, ns, out = run_case(2112, tile_batch=512, force_tiled=True)
    ref_tight = _reference(s, ns, params, match_kernel_precision=True)
    assert jnp.allclose(out, ref_tight, rtol=5e-3, atol=1e-6), "slab tiled ref"

    # 3) Tiled fallback path (B not a multiple of 64): ragged last tile + mask.
    s, ns, out = run_case(1000, tile_batch=256, force_tiled=True)
    ref_tight = _reference(s, ns, params, match_kernel_precision=True)
    assert jnp.allclose(out, ref_tight, rtol=5e-3, atol=1e-6), "fallback tiled ref"

    # TODO(synk): inv_loss (mean L1) is a training-time loss, not part of forward.
    print("KERNEL_OK")
</pallas_src>

<mosaic_0001>
module attributes {stable_mosaic.version = 11 : i64} {
  func.func @_fused_kernel(%arg0: i32, %arg1: memref<16x14xf32, #tpu.memory_space<vmem>>, %arg2: memref<16x14xf32, #tpu.memory_space<vmem>>, %arg3: memref<14x10xbf16, #tpu.memory_space<vmem>>, %arg4: memref<14x10xbf16, #tpu.memory_space<vmem>>, %arg5: memref<1x10xf32, #tpu.memory_space<vmem>>, %arg6: memref<10x3xbf16, #tpu.memory_space<vmem>>, %arg7: memref<16x3xf32, #tpu.memory_space<vmem>>) attributes {dimension_semantics = [#tpu.dimension_semantics<arbitrary>], iteration_bounds = array<i64: 1>, scalar_prefetch = 0 : i64, scratch_operands = 0 : i64, tpu.core_type = #tpu.core_type<tc>, window_params = [{transform_indices = @transform_0, window_bounds = array<i64: 16, 14>}, {transform_indices = @transform_1, window_bounds = array<i64: 16, 14>}, {pipeline_mode = #tpu.pipeline_mode<synchronous>, transform_indices = @transform_2, window_bounds = array<i64: 14, 10>}, {pipeline_mode = #tpu.pipeline_mode<synchronous>, transform_indices = @transform_3, window_bounds = array<i64: 14, 10>}, {pipeline_mode = #tpu.pipeline_mode<synchronous>, transform_indices = @transform_4, window_bounds = array<i64: 1, 10>}, {pipeline_mode = #tpu.pipeline_mode<synchronous>, transform_indices = @transform_5, window_bounds = array<i64: 10, 3>}, {transform_indices = @transform_6, window_bounds = array<i64: 16, 3>}]} {
    %c0 = arith.constant 0 : index
    %c0_0 = arith.constant 0 : index
    %0 = vector.load %arg1[%c0, %c0_0] : memref<16x14xf32, #tpu.memory_space<vmem>>, vector<16x14xf32>
    %1 = arith.truncf %0 : vector<16x14xf32> to vector<16x14xbf16>
    %c0_1 = arith.constant 0 : index
    %c0_2 = arith.constant 0 : index
    %2 = vector.load %arg2[%c0_1, %c0_2] : memref<16x14xf32, #tpu.memory_space<vmem>>, vector<16x14xf32>
    %3 = arith.truncf %2 : vector<16x14xf32> to vector<16x14xbf16>
    %c0_3 = arith.constant 0 : index
    %c0_4 = arith.constant 0 : index
    %4 = vector.load %arg3[%c0_3, %c0_4] : memref<14x10xbf16, #tpu.memory_space<vmem>>, vector<14x10xbf16>
    %cst = arith.constant dense<0.000000e+00> : vector<16x10xf32>
    %5 = tpu.matmul %1, %4, %cst {dimension_numbers = #tpu.dot_dimension_numbers<[1], [0], [0], [1], [0, 0, 1, 1], [], []>} : vector<16x14xbf16>, vector<14x10xbf16>, vector<16x10xf32> -> vector<16x10xf32>
    %c0_5 = arith.constant 0 : index
    %c0_6 = arith.constant 0 : index
    %6 = vector.load %arg4[%c0_5, %c0_6] : memref<14x10xbf16, #tpu.memory_space<vmem>>, vector<14x10xbf16>
    %cst_7 = arith.constant dense<0.000000e+00> : vector<16x10xf32>
    %7 = tpu.matmul %3, %6, %cst_7 {dimension_numbers = #tpu.dot_dimension_numbers<[1], [0], [0], [1], [0, 0, 1, 1], [], []>} : vector<16x14xbf16>, vector<14x10xbf16>, vector<16x10xf32> -> vector<16x10xf32>
    %8 = arith.addf %5, %7 : vector<16x10xf32>
    %c0_8 = arith.constant 0 : index
    %c0_9 = arith.constant 0 : index
    %9 = vector.load %arg5[%c0_8, %c0_9] : memref<1x10xf32, #tpu.memory_space<vmem>>, vector<1x10xf32>
    %10 = vector.broadcast %9 : vector<1x10xf32> to vector<16x10xf32>
    %11 = arith.addf %8, %10 : vector<16x10xf32>
    %cst_10 = arith.constant 0.000000e+00 : f32
    %12 = vector.broadcast %cst_10 : f32 to vector<16x10xf32>
    %13 = arith.cmpf ogt, %11, %12 : vector<16x10xf32>
    %cst_11 = arith.constant 0.00999999977 : f32
    %14 = vector.broadcast %cst_11 : f32 to vector<16x10xf32>
    %15 = arith.mulf %14, %11 : vector<16x10xf32>
    %16 = arith.select %13, %11, %15 : vector<16x10xi1>, vector<16x10xf32>
    %17 = arith.truncf %16 : vector<16x10xf32> to vector<16x10xbf16>
    %c0_12 = arith.constant 0 : index
    %c0_13 = arith.constant 0 : index
    %18 = vector.load %arg6[%c0_12, %c0_13] : memref<10x3xbf16, #tpu.memory_space<vmem>>, vector<10x3xbf16>
    %cst_14 = arith.constant dense<0.000000e+00> : vector<16x3xf32>
    %19 = tpu.matmul %17, %18, %cst_14 {dimension_numbers = #tpu.dot_dimension_numbers<[1], [0], [0], [1], [0, 0, 1, 1], [], []>} : vector<16x10xbf16>, vector<10x3xbf16>, vector<16x3xf32> -> vector<16x3xf32>
    %20 = tpu.iota {dimensions = array<i32: 0>} : vector<16x3xi32>
    %c2_i32 = arith.constant 2 : i32
    %21 = vector.broadcast %c2_i32 : i32 to vector<16x3xi32>
    %22 = arith.cmpi slt, %20, %21 : vector<16x3xi32>
    %cst_15 = arith.constant -1.000000e+30 : f32
    %23 = vector.broadcast %cst_15 : f32 to vector<16x3xf32>
    %24 = arith.select %22, %19, %23 : vector<16x3xi1>, vector<16x3xf32>
    %cst_16 = arith.constant dense<0xFF800000> : vector<3xf32>
    %25 = vector.multi_reduction <maximumf>, %24, %cst_16 [0] : vector<16x3xf32> to vector<3xf32>
    %26 = vector.shape_cast %25 : vector<3xf32> to vector<1x3xf32>
    %27 = vector.broadcast %26 : vector<1x3xf32> to vector<16x3xf32>
    %28 = arith.subf %24, %27 : vector<16x3xf32>
    %29 = math.exp %28 : vector<16x3xf32>
    %cst_17 = arith.constant dense<0.000000e+00> : vector<3xf32>
    %30 = vector.multi_reduction <add>, %29, %cst_17 [0] : vector<16x3xf32> to vector<3xf32>
    %31 = vector.shape_cast %30 : vector<3xf32> to vector<1x3xf32>
    %cst_18 = arith.constant 1.000000e+00 : f32
    %32 = vector.broadcast %cst_18 : f32 to vector<1x3xf32>
    %33 = arith.divf %32, %31 : vector<1x3xf32>
    %34 = vector.broadcast %33 : vector<1x3xf32> to vector<16x3xf32>
    %35 = arith.mulf %29, %34 : vector<16x3xf32>
    %c0_19 = arith.constant 0 : index
    %c0_20 = arith.constant 0 : index
    %36 = vector.load %arg7[%c0_19, %c0_20] : memref<16x3xf32, #tpu.memory_space<vmem>>, vector<16x3xf32>
    tpu.vector_store %arg7[%c0_19, %c0_20], %35 {strides = array<i32>} : memref<16x3xf32, #tpu.memory_space<vmem>>, vector<16x3xf32>,
    return
  }
  func.func @transform_0(%arg0: i32) -> (i32, i32) {
    %c0_i32 = arith.constant 0 : i32
    %c0_i32_0 = arith.constant 0 : i32
    %c0_i32_1 = arith.constant 0 : i32
    return %c0_i32, %c0_i32_0 : i32, i32
  }
  func.func @transform_1(%arg0: i32) -> (i32, i32) {
    %c0_i32 = arith.constant 0 : i32
    %c0_i32_0 = arith.constant 0 : i32
    %c0_i32_1 = arith.constant 0 : i32
    return %c0_i32, %c0_i32_0 : i32, i32
  }
  func.func @transform_2(%arg0: i32) -> (i32, i32) {
    %c0_i32 = arith.constant 0 : i32
    %c0_i32_0 = arith.constant 0 : i32
    %c0_i32_1 = arith.constant 0 : i32
    return %c0_i32, %c0_i32_0 : i32, i32
  }
  func.func @transform_3(%arg0: i32) -> (i32, i32) {
    %c0_i32 = arith.constant 0 : i32
    %c0_i32_0 = arith.constant 0 : i32
    %c0_i32_1 = arith.constant 0 : i32
    return %c0_i32, %c0_i32_0 : i32, i32
  }
  func.func @transform_4(%arg0: i32) -> (i32, i32) {
    %c0_i32 = arith.constant 0 : i32
    %c0_i32_0 = arith.constant 0 : i32
    %c0_i32_1 = arith.constant 0 : i32
    return %c0_i32, %c0_i32_0 : i32, i32
  }
  func.func @transform_5(%arg0: i32) -> (i32, i32) {
    %c0_i32 = arith.constant 0 : i32
    %c0_i32_0 = arith.constant 0 : i32
    %c0_i32_1 = arith.constant 0 : i32
    return %c0_i32, %c0_i32_0 : i32, i32
  }
  func.func @transform_6(%arg0: i32) -> (i32, i32) {
    %c0_i32 = arith.constant 0 : i32
    %c0_i32_0 = arith.constant 0 : i32
    %c0_i32_1 = arith.constant 0 : i32
    return %c0_i32, %c0_i32_0 : i32, i32
  }
}

</mosaic_0001>

<bundles_post_ra>
// kernel: inverse_model_forward.1
= control target key start
LH: loop header
LB: loop body
LE: loop exit
PB: predicated region body
PF: predicated region fallthrough
CT: control target
= control target key end

     0   :  { %11 = vsyncpa [#allocation3], 0  ;;  %vm44_vm0 = vcmask 1046528   ;;  %v335_v0 = vmov 0.0   ;;  %vm336_vm1 = vmmov 0   ;;  %vm40_vm2 = vcmask 113664   ;;  %s409_s0 = inlined_call_operand.vmem [shape: f32[2,14], index: 0, kind: input, shape index: {}]   ;;  %s410_s1 = inlined_call_operand.vmem [shape: f32[2,14], index: 1, kind: input, shape index: {}]   ;;  %s411_s2 = inlined_call_operand.vmem [shape: bf16[14,10], index: 2, kind: input, shape index: {}]   ;;  %s412_s3 = inlined_call_operand.vmem [shape: bf16[14,10], index: 3, kind: input, shape index: {}]   ;;  %s413_s4 = inlined_call_operand.vmem [shape: f32[1,10], index: 4, kind: input, shape index: {}]   ;;  %s414_s5 = inlined_call_operand.vmem [shape: bf16[10,3], index: 5, kind: input, shape index: {}]   ;;  %s415_s6 = inlined_call_operand.hbm [shape: f32[2,3], index: 6, kind: output, shape index: {}]  }
   0x1   :  { %280 = vmatprep.subr.bf16.mxu0 %v335_v0  ;;  %286 = vmatprep.subr.bf16.mxu1 %v335_v0  ;;  %v304_v1 = vld [vmem:[%s412_s3] sm:$0x7f]   ;;  %v29_v5 = vld [vmem:[%s410_s1 + $0x8] sm:$0xff]  ;;  %vm168_vm3 = vcmask 1044480   ;;  %vm164_vm6 = vcmask 80896   ;;  %v213_v31 = vlaneseq  ;;  %vm220_vm7 = vcmask 23552  }
   0x2   :  { %v305_v2 = vld [vmem:[%s411_s2] sm:$0x7f]   ;;  %v46_v4 = vsel %vm44_vm0, %v304_v1, 0  ;;  %282 = vmatprep.mubr.msk.bf16.mxu0 %vm336_vm1, %v335_v0  ;;  %288 = vmatprep.mubr.msk.bf16.mxu1 %vm336_vm1, %v335_v0  ;;  %v26_v7 = vld [vmem:[%s409_s0 + $0x8] sm:$0xff]  ;;  %v337_v34 = vmov -inf  }
   0x3   :  { %v28_v3 = vld [vmem:[%s410_s1] sm:$0xff]  ;;  %281 = vmatpush3.bf16.msra.mxu0 %v46_v4  ;;  %v98_v8 = vsel %vm44_vm0, %v305_v2, 0  ;;  %v214_v32 = vshrl.u32 %v213_v31, 7  ;;  %v222_v35 = vsel %vm220_vm7, -1e+30, %v337_v34 }
   0x4   :  { %v25_v6 = vld [vmem:[%s409_s0] sm:$0xff]  ;;  %v30_v9 = vpack.c.bf16 %v29_v5, %v28_v3  ;;  %287 = vmatpush3.bf16.msra.mxu1 %v98_v8  ;;  %292 = vmatprep.subr.bf16.mxu0 %v335_v0 }
   0x5   :  { %v27_v10 = vpack.c.bf16 %v26_v7, %v25_v6  ;;  %v306_v11 = vld [vmem:[%s414_s5] sm:$0x1f]   ;;  %vm216_vm8 = vcmp.lt.s32.totalorder %v214_v32, 2 }
   0x6   :  { %283 = vmatmul.mubr.msk.bf16.vlgmr.msra.gmra.mxu0 %vm40_vm2, %v30_v9  ;;  %v170_v12 = vsel %vm168_vm3, %v306_v11, 0  ;;  %v271_v15 = vld [vmem:[%s413_s4] ss:$0 sm:$0xff] }
   0x7   :  { %289 = vmatmul.mubr.msk.bf16.vlgmr.msra.gmra.mxu1 %vm40_vm2, %v27_v10  ;;  %294 = vmatprep.mubr.msk.bf16.mxu0 %vm336_vm1, %v335_v0 }
   0x8   :  { %293 = vmatpush3.bf16.msra.mxu0 %v170_v12 }
  0xc6   :  { %v82_v13 = vpop.f32.mrf.mxu0 }
  0xc7   :  { %v134_v14 = vpop.f32.mrf.mxu1 }
  0xc8   :  { %v135_v16 = vadd.f32 %v134_v14, %v82_v13  ;;  %v284_v17 = vpop.f32.mrf.mxu0 }
  0xc9   :  { %v290_v18 = vpop.f32.mrf.mxu1 }
  0xca   :  { %v148_v19 = vadd.f32 %v271_v15, %v135_v16  ;;  %v85_v20 = vpop.f32.mrf.mxu0 }
  0xcb   :  { %v137_v21 = vpop.f32.mrf.mxu1 }
  0xcc   :  { %v138_v22 = vadd.f32 %v137_v21, %v85_v20  ;;  %v285_v23 = vpop.f32.mrf.mxu0  ;;  %v152_v25 = vmul.f32 0.01, %v148_v19  ;;  %vm150_vm4 = vcmp.gt.f32.partialorder %v148_v19, 0.0 }
  0xcd   :  { %v291_v24 = vpop.f32.mrf.mxu1 }
  0xce   :  { %v149_v26 = vadd.f32 %v271_v15, %v138_v22  ;;  %v154_v28 = vsel %vm150_vm4, %v148_v19, %v152_v25 }
  0xd0   :  { %vm151_vm5 = vcmp.gt.f32.partialorder %v149_v26, 0.0  ;;  %v153_v27 = vmul.f32 0.01, %v149_v26 }
  0xd2   :  { %v155_v29 = vsel %vm151_vm5, %v149_v26, %v153_v27 }
  0xd3   :  { %v156_v30 = vpack.c.bf16 %v155_v29, %v154_v28 }
  0xd5   :  { %295 = vmatmul.mubr.msk.bf16.vlgmr.msra.gmra.mxu0 %vm164_vm6, %v156_v30 }
 0x195   :  { %v206_v33 = vpop.f32.mrf.mxu0 }
 0x196   :  { %v218_v36 = vsel %vm216_vm8, %v206_v33, -1e+30 }
 0x197   :  { %v221_v37 = vsel %vm220_vm7, %v218_v36, -inf  ;;  %v296_v38 = vpop.f32.mrf.mxu0 }
 0x198   :  { %v223_v39 = vmax.f32 %v221_v37, %v222_v35 }
 0x199   :  { %v209_v40 = vpop.f32.mrf.mxu0 }
 0x19a   :  { %v224_v41 = vrot.slane %v223_v39, 4 }
 0x19b   :  { %v297_v42 = vpop.f32.mrf.mxu0 }
 0x19c   :  { %v225_v43 = vmax.f32 %v223_v39, %v224_v41 }
 0x19e   :  { %v226_v44 = vrot.slane %v225_v43, 2 }
 0x1a0   :  { %v227_v45 = vmax.f32 %v225_v43, %v226_v44 }
 0x1a2   :  { %v228_v46 = vrot.slane %v227_v45, 1 }
 0x1a4   :  { %v229_v47 = vmax.f32 %v227_v45, %v228_v46 }
 0x1a6   :  { %v230_v48 = vsub.f32 %v218_v36, %v229_v47  ;;  %v231_v49 = vsub.f32 -1e+30, %v229_v47 }
 0x1a8   :  { %v232_v50 = vmul.f32 1.442695, %v230_v48  ;;  %v234_v51 = vmul.f32 1.442695, %v231_v49 }
 0x1aa   :  { %307 = vpow2.f32 %v232_v50 }
 0x1ab   :  { %309 = vpow2.f32 %v234_v51 }
 0x1b7   :  { %v308_v52 = vpop.eup %307 }
 0x1b8   :  { %v310_v53 = vpop.eup %309  ;;  %v236_v54 = vsel %vm220_vm7, %v308_v52, 0.0 }
 0x1b9   :  { %v237_v55 = vsel %vm220_vm7, %v310_v53, 0.0 }
 0x1ba   :  { %v238_v56 = vadd.f32 %v237_v55, %v236_v54 }
 0x1bc   :  { %v239_v57 = vrot.slane %v238_v56, 4 }
 0x1be   :  { %v240_v58 = vadd.f32 %v239_v57, %v238_v56 }
 0x1c0   :  { %v241_v59 = vrot.slane %v240_v58, 2 }
 0x1c2   :  { %v242_v60 = vadd.f32 %v241_v59, %v240_v58 }
 0x1c4   :  { %v243_v61 = vrot.slane %v242_v60, 1 }
 0x1c6   :  { %v244_v62 = vadd.f32 %v243_v61, %v242_v60 }
 0x1c8   :  { %311 = vrcp.f32 %v244_v62 }
 0x1d5   :  { %v312_v63 = vpop.eup %311 }
 0x1d6   :  { %v247_v0 = vmul.f32 %v312_v63, %v308_v52  ;;  %v248_v1 = vmul.f32 %v312_v63, %v310_v53 }
 0x1d8   :  { %249 = vst.msk [vmem:[#allocation2] sm:$0xff] %vm220_vm7, %v247_v0  ;;  %250 = vst.msk [vmem:[#allocation2 + $0x8] sm:$0xff] %vm220_vm7, %v248_v1 }
 0x1d9   :  { %255 = vsyncadd [#allocation3], 224  ;;  %s338_s4 = smov [#allocation2]  }
 0x1da   :  { %s256_s5 = sshll.u32 %s338_s4, 4  ;;  %s257_s5 = int_to_ptr.vmem [resolvable:$true] %s256_s5 }
 0x1db   :  { %s313_s9 = scalar_lea.vmem %s257_s5, 32  ;;  %s317_s10 = scalar_lea.vmem %s257_s5, 256 }
 0x1dc   :  { %p314_p0 = scmp.ne.s32.totalorder %s257_s5, %s313_s9  ;;  %p318_p1 = scmp.lt.s32.totalorder %s257_s5, %s257_s5 }
 0x1dd   :  { %p319_p2 = scmp.lt.s32.totalorder %s317_s10, %s313_s9 }
 0x1df   :  { %p320_p3 = por %p319_p2, %p318_p1 }
 0x1e1   :  { %p321_p4 = pnand %p320_p3, %p314_p0 }
 0x1e3   :  { %324 = shalt.err (!%p321_p4)
}
 0x1e4   :  { %s339_s11 = smov 32   ;;  %s340_s12 = smov 2  }
 0x1e5   :  { %262 = dma.vmem_to_hbm [thread:$0]  %s257_s5, 32, %s415_s6, [#allocation3], %s339_s11, %s339_s11, %s340_s12  }
 0x1e6   :  { %333 = dma.done.wait [#allocation3], 256  }
 0x1e7   :  { %334 = vsyncadd [#allocation3], 4294967040 }
 0x1e8   :  { %266 = vsyncpa [#allocation3], 1 }

</bundles_post_ra>
